<compile_context>
chip_gen: v7x
topology: tpu7x:2x2x1
jax: 0.10.0
libtpu: 0.0.40
codegen_flags: <defaults>
</compile_context>

<pallas_src>
import functools

import jax
import jax.numpy as jnp
from jax import lax
from jax.experimental import pallas as pl
from jax.experimental.pallas import tpu as pltpu

KERNEL_SIZES = (3, 4, 5)
LANE = 128


def _round_up(x, m):
    return ((x + m - 1) // m) * m


def _vmem_limit_bytes():
    """Per-generation scoped-VMEM limit: 96 MiB on 128 MiB parts, 48 MiB on v7x."""
    try:
        phys = int(pltpu.get_tpu_info().vmem_capacity_bytes)
    except Exception:  # pragma: no cover - conservative fallback
        phys = 64 * 1024 * 1024
    return min(96 * 1024 * 1024, (phys * 3) // 4)


def _pick_block_b(B, L_pad, E_pad, NF, vmem_limit):
    """Pick the batch tile so the MXU M dim is filled but VMEM still fits."""
    b_ceil = _round_up(max(B, 1), 8)
    # Per-sequence live set: emb bf16 (double-buffered) + f32 conv accumulator,
    # its rolled per-tap temporary and the reshaped/masked copy.
    per_b = 4 * L_pad * E_pad + 16 * L_pad * NF
    budget = vmem_limit // 2
    cap = max(8, (budget // max(per_b, 1)) // 8 * 8)
    # Targets: conv M = block_b*L_pad >= 512 and FC M = block_b >= 128.
    target = max(128, _round_up((512 + L_pad - 1) // L_pad, 8))
    blk = max(8, min(cap, target, b_ceil))
    # Prefer >= 2 grid steps so the "parallel" batch axis can shard across cores.
    if b_ceil > 8 and blk >= b_ceil:
        blk = max(8, _round_up((b_ceil + 1) // 2, 8))
    return blk


# ----------------------------------------------------------------------------
# Tiny probe: confirm pltpu.roll's shift direction matches jnp.roll on this
# backend so the per-tap shift below is provably correct either way.
# ----------------------------------------------------------------------------
def _roll_probe_kernel(x_ref, o_ref):
    o_ref[...] = pltpu.roll(x_ref[...], 1, 0)


@functools.lru_cache(maxsize=None)
def _roll_matches_jnp():
    x = jnp.tile(jnp.arange(8, dtype=jnp.float32)[:, None], (1, LANE))
    out = pl.pallas_call(
        _roll_probe_kernel,
        out_shape=jax.ShapeDtypeStruct((8, LANE), jnp.float32))(x)
    # jnp.roll(x, 1, 0)[1, 0] == x[0, 0] == 0
    return bool(float(out[1, 0]) == 0.0)


# ----------------------------------------------------------------------------
# Fused kernel: merged conv(k=3,4,5) + ReLU + max-pool + fc + softmax.
# ----------------------------------------------------------------------------
def cnn_text_kernel(emb_ref, wtap_ref, ball_ref, wfc_ref, bfc_ref, out_ref,
                    *, l_pad, l_true, f_pad, jnp_roll):
    """
    emb_ref  : (TB*l_pad, E_pad)      bf16  flattened batch tile of embeddings
    wtap_ref : (k_max*E_pad, 3*F_pad) bf16  merged per-tap conv weights
    ball_ref : (1, 3*F_pad)           f32   concatenated conv biases
    wfc_ref  : (3*F_pad, C_pad)       bf16
    bfc_ref  : (1, C_pad)             f32   (-1e30 on padded class columns)
    out_ref  : (TB, C_pad)            f32
    """
    S, e_pad = emb_ref.shape
    tb = S // l_pad
    nf = ball_ref.shape[-1]
    n_taps = wtap_ref.shape[0] // e_pad

    emb2d = emb_ref[...]                                            # (S, E_pad) bf16

    # conv[p] = sum_j (emb @ W_j)[p + j]: one wide MXU matmul per tap, then an
    # XLU roll of the f32 result replaces the im2col patch materialization.
    acc = jnp.dot(emb2d, wtap_ref[0:e_pad, :],
                  preferred_element_type=jnp.float32)               # (S, 3*F_pad)
    for j in range(1, n_taps):
        y = jnp.dot(emb2d, wtap_ref[j * e_pad:(j + 1) * e_pad, :],
                    preferred_element_type=jnp.float32)
        shift = (S - j) if jnp_roll else j                          # row i <- row i+j
        acc = acc + pltpu.roll(y, shift, 0)

    conv = jnp.maximum(acc + ball_ref[...], 0.0)                    # bias + ReLU (f32)

    # Zero window positions that would cross the sequence end / padded rows.
    # Exact for the max-pool because ReLU outputs are >= 0.  Per-lane-block
    # threshold (l_true - k + 1); no modulo / divide needed.
    thresh = jnp.concatenate(
        [jnp.full((1, f_pad), l_true - k + 1, jnp.int32) for k in KERNEL_SIZES],
        axis=-1)                                                    # (1, 3*F_pad)
    pos = lax.broadcasted_iota(jnp.int32, (l_pad, nf), 0)           # (l_pad, 3*F_pad)
    valid = pos < thresh

    conv = jnp.where(valid[None], conv.reshape(tb, l_pad, nf), 0.0)
    feat = jnp.max(conv, axis=1)                                    # (TB, 3*F_pad)

    # TODO(synk): nn.Dropout(0.5) omitted (identity at inference time).
    logits = jnp.dot(feat.astype(wfc_ref.dtype), wfc_ref[...],
                     preferred_element_type=jnp.float32) + bfc_ref[...]
    # Padded class columns carry a -1e30 bias -> softmax unchanged.
    m = jnp.max(logits, axis=-1, keepdims=True)
    e = jnp.exp(logits - m)
    s = jnp.sum(e, axis=-1, keepdims=True)
    out_ref[...] = (e * pl.reciprocal(s, approx=True)).astype(out_ref.dtype)


# ----------------------------------------------------------------------------
# Wrapper: padding / layout glue in plain JAX, hot path in Pallas.
# ----------------------------------------------------------------------------
def cnn_text_forward(tokens, params, *, block_b=None):
    emb_table = params["embedding"]
    E = emb_table.shape[1]
    F = params[f"conv{KERNEL_SIZES[0]}_b"].shape[-1]
    C = params["fc_b"].shape[-1]
    n_k = len(KERNEL_SIZES)
    k_max = max(KERNEL_SIZES)

    E_pad = _round_up(E, LANE)
    F_pad = _round_up(F, LANE)
    C_pad = _round_up(C, LANE)
    NF = n_k * F_pad

    B, L = tokens.shape
    L_pad = _round_up(L, 8)

    vmem_limit = _vmem_limit_bytes()
    if block_b is None:
        block_b = _pick_block_b(B, L_pad, E_pad, NF, vmem_limit)
    B_pad = _round_up(B, block_b)

    # Single padded gather: pad the (small) table to E_pad in bf16 and the token
    # ids to (B_pad, L_pad); one jnp.take writes the lane-dense tensor the kernel
    # reads (garbage in L padding is masked in-kernel; batch padding is sliced off).
    # TODO(synk): fully fusing the gather into the kernel (scalar-prefetched ids
    # + per-row DMA from the table) would remove even this single HBM pass.
    table = jnp.pad(emb_table.astype(jnp.bfloat16), ((0, 0), (0, E_pad - E)))
    tok = jnp.pad(tokens, ((0, B_pad - B), (0, L_pad - L)))
    emb_flat = jnp.take(table, tok, axis=0).reshape(B_pad * L_pad, E_pad)

    # Merged per-tap conv weights: rows [j*E_pad:(j+1)*E_pad] hold tap j of every
    # filter size side by side along lanes (zero block where the tap doesn't exist).
    w_tap = jnp.zeros((k_max, E_pad, NF), jnp.float32)
    b_all = []
    for ki, k in enumerate(KERNEL_SIZES):
        w = jnp.pad(params[f"conv{k}_w"], ((0, 0), (0, E_pad - E), (0, F_pad - F)))
        w_tap = w_tap.at[:k, :, ki * F_pad:(ki + 1) * F_pad].set(w)
        b_all.append(jnp.pad(params[f"conv{k}_b"], ((0, 0), (0, F_pad - F))))
    w_tap = w_tap.reshape(k_max * E_pad, NF).astype(jnp.bfloat16)
    b_all = jnp.concatenate(b_all, axis=-1)                          # (1, NF) f32

    # FC weight regrouped to the padded [F_pad | F_pad | F_pad] feature layout.
    wfc = params["fc_w"].reshape(n_k, F, C)
    wfc = jnp.pad(wfc, ((0, 0), (0, F_pad - F), (0, C_pad - C)))
    wfc = wfc.reshape(NF, C_pad).astype(jnp.bfloat16)
    bfc = jnp.pad(params["fc_b"], ((0, 0), (0, C_pad - C)),
                  constant_values=-1e30)                             # kill padded logits

    kernel = functools.partial(cnn_text_kernel, l_pad=L_pad, l_true=L,
                               f_pad=F_pad, jnp_roll=_roll_matches_jnp())
    grid = (B_pad // block_b,)

    def call(single_buffer_weights):
        const = (dict(pipeline_mode=pl.Buffered(1))
                 if single_buffer_weights else {})
        return pl.pallas_call(
            kernel,
            out_shape=jax.ShapeDtypeStruct((B_pad, C_pad), jnp.float32),
            grid=grid,
            in_specs=[
                pl.BlockSpec((block_b * L_pad, E_pad), lambda i: (i, 0)),
                pl.BlockSpec((k_max * E_pad, NF), lambda i: (0, 0), **const),
                pl.BlockSpec((1, NF), lambda i: (0, 0), **const),
                pl.BlockSpec((NF, C_pad), lambda i: (0, 0), **const),
                pl.BlockSpec((1, C_pad), lambda i: (0, 0), **const),
            ],
            out_specs=pl.BlockSpec((block_b, C_pad), lambda i: (i, 0)),
            compiler_params=pltpu.CompilerParams(
                dimension_semantics=("parallel",),       # megacore-shardable batch axis
                vmem_limit_bytes=vmem_limit),
        )(emb_flat, w_tap, b_all, wfc, bfc)

    try:
        out = jax.block_until_ready(call(True))   # weights single-buffered
    except Exception:                             # pragma: no cover - fallback
        out = call(False)                         # default double-buffered weights
    return out[:B, :C]


# ----------------------------------------------------------------------------
# Parameter init + pure-JAX f32 reference (matches CNN_Text.forward, dropout=id)
# ----------------------------------------------------------------------------
def init_params(key, num_vocab, embed_dim, class_num, num_filters):
    ks = jax.random.split(key, 9)
    params = {
        "embedding": jax.random.normal(ks[0], (num_vocab, embed_dim), jnp.float32) * 0.1,
    }
    for i, k in enumerate(KERNEL_SIZES):
        params[f"conv{k}_w"] = (
            jax.random.normal(ks[1 + 2 * i], (k, embed_dim, num_filters), jnp.float32) * 0.1
        )
        params[f"conv{k}_b"] = (
            jax.random.normal(ks[2 + 2 * i], (1, num_filters), jnp.float32) * 0.1
        )
    params["fc_w"] = (
        jax.random.normal(ks[7], (len(KERNEL_SIZES) * num_filters, class_num), jnp.float32) * 0.1
    )
    params["fc_b"] = jax.random.normal(ks[8], (1, class_num), jnp.float32) * 0.1
    return params


def reference_forward(tokens, params):
    emb = jnp.take(params["embedding"], tokens, axis=0)              # (B, L, E)
    L = emb.shape[1]
    feats = []
    for k in KERNEL_SIZES:
        L_out = L - k + 1
        taps = jnp.stack([emb[:, j:j + L_out, :] for j in range(k)], axis=2)   # (B,L_out,k,E)
        conv = jnp.einsum("blke,kef->blf", taps, params[f"conv{k}_w"]) + params[f"conv{k}_b"]
        feats.append(jnp.max(jnp.maximum(conv, 0.0), axis=1))        # (B, F)
    feat = jnp.concatenate(feats, axis=-1)                           # (B, 3F)
    logits = feat @ params["fc_w"] + params["fc_b"]
    return jax.nn.softmax(logits, axis=-1)


if __name__ == "__main__":
    # Small, deterministic config consistent with CNN_Text's forward pass.
    num_vocab, embed_dim, class_num, num_filters = 50, 32, 5, 16
    B, L = 2, 16

    key = jax.random.PRNGKey(0)
    k_tok, k_par = jax.random.split(key)
    tokens = jax.random.randint(k_tok, (B, L), 0, num_vocab, dtype=jnp.int32)
    params = init_params(k_par, num_vocab, embed_dim, class_num, num_filters)

    out = jax.block_until_ready(cnn_text_forward(tokens, params))
    ref = jax.block_until_ready(reference_forward(tokens, params))

    assert out.shape == (B, class_num)
    # softmax rows sum to ~1 (approx reciprocal -> loose tolerance)
    assert jnp.allclose(jnp.sum(out, axis=1), 1.0, atol=1e-2)
    # matches the f32 reference up to bf16 / approx-reciprocal rounding
    assert jnp.allclose(out, ref, atol=3e-2)
    print("KERNEL_OK")
</pallas_src>

<mosaic_0001>
module attributes {stable_mosaic.version = 11 : i64} {
  func.func @_roll_probe_kernel(%arg0: memref<8x128xf32, #tpu.memory_space<vmem>>, %arg1: memref<8x128xf32, #tpu.memory_space<vmem>>) attributes {dimension_semantics = [], scalar_prefetch = 0 : i64, scratch_operands = 0 : i64, tpu.core_type = #tpu.core_type<tc>} {
    %c0 = arith.constant 0 : index
    %c0_0 = arith.constant 0 : index
    %0 = vector.load %arg0[%c0, %c0_0] : memref<8x128xf32, #tpu.memory_space<vmem>>, vector<8x128xf32>
    %c1_i32 = arith.constant 1 : i32
    %1 = tpu.dynamic_rotate %0 by %c1_i32 dim 0 : vector<8x128xf32>, i32 -> vector<8x128xf32>
    %c0_1 = arith.constant 0 : index
    %c0_2 = arith.constant 0 : index
    %2 = vector.load %arg1[%c0_1, %c0_2] : memref<8x128xf32, #tpu.memory_space<vmem>>, vector<8x128xf32>
    tpu.vector_store %arg1[%c0_1, %c0_2], %1 {strides = array<i32>} : memref<8x128xf32, #tpu.memory_space<vmem>>, vector<8x128xf32>,
    return
  }
}

</mosaic_0001>

<bundles_post_ra>
// kernel: tpu_custom_call.1
= control target key start
LH: loop header
LB: loop body
LE: loop exit
PB: predicated region body
PF: predicated region fallthrough
CT: control target
= control target key end

     0   :  { %6 = vsyncpa [#allocation3], 0  ;;  %s125_s0 = inlined_call_operand.hbm [shape: f32[8,128], index: 0, kind: input, shape index: {}]   ;;  %s126_s1 = inlined_call_operand.hbm [shape: f32[8,128], index: 1, kind: output, shape index: {}]  }
   0x1   :  { %7 = vsyncpa [#allocation4], 0  ;;  %s89_s6 = smov [#allocation2]   ;;  %s41_s10 = scalar_lea.hbm %s125_s0, 128 }
   0x2   :  { %s14_s7 = sshll.u32 %s89_s6, 4  ;;  %p42_p0 = scmp.ne.s32.totalorder %s125_s0, %s41_s10  ;;  %s15_s7 = int_to_ptr.vmem [resolvable:$true] %s14_s7 }
   0x3   :  { %p45_p1 = scmp.lt.u32.totalorder %s41_s10, %s125_s0 }
   0x5   :  { %p47_p2 = pnand %p45_p1, %p42_p0 }
   0x7   :  { %50 = shalt.err (!%p47_p2)
}
   0x8   :  { %s51_s15 = scalar_lea.vmem %s15_s7, 128  ;;  %p56_p4 = scmp.lt.s32.totalorder %s15_s7, %s15_s7 }
   0x9   :  { %p52_p3 = scmp.ne.s32.totalorder %s15_s7, %s51_s15  ;;  %p57_p5 = scmp.lt.s32.totalorder %s51_s15, %s51_s15 }
   0xb   :  { %p58_p6 = por %p57_p5, %p56_p4 }
   0xd   :  { %p59_p7 = pnand %p58_p6, %p52_p3 }
   0xf   :  { %62 = shalt.err (!%p59_p7)
}
  0x10   :  { %17 = dma.hbm_to_vmem [thread:$0]  %s125_s0, 128, %s15_s7, [#allocation3]  }
  0x11   :  { %85 = dma.done.wait [#allocation3], 128  }
  0x12   :  { %86 = vsyncadd [#allocation3], 4294967168  ;;  %s90_s18 = smov [#allocation5]   ;;  %v21_v0 = vld [vmem:[#allocation2] sm:$0xff] }
  0x13   :  { %s30_s19 = sshll.u32 %s90_s18, 4  ;;  %v22_v1 = vrot.slane %v21_v0, 7  ;;  %s31_s19 = int_to_ptr.vmem [resolvable:$true] %s30_s19 }
  0x14   :  { %s63_s20 = scalar_lea.vmem %s31_s19, 128  ;;  %p68_p9 = scmp.lt.s32.totalorder %s31_s19, %s31_s19 }
  0x15   :  { %23 = vst [vmem:[#allocation5] sm:$0xff] %v22_v1  ;;  %p64_p8 = scmp.ne.s32.totalorder %s31_s19, %s63_s20  ;;  %p69_p10 = scmp.lt.s32.totalorder %s63_s20, %s63_s20 }
  0x17   :  { %p70_p11 = por %p69_p10, %p68_p9 }
  0x19   :  { %p71_p12 = pnand %p70_p11, %p64_p8 }
  0x1b   :  { %74 = shalt.err (!%p71_p12)
}
  0x1c   :  { %s75_s23 = scalar_lea.hbm %s126_s1, 128 }
  0x1d   :  { %p76_p13 = scmp.ne.s32.totalorder %s126_s1, %s75_s23  ;;  %p79_p0 = scmp.lt.u32.totalorder %s75_s23, %s126_s1 }
  0x1f   :  { %p81_p1 = pnand %p79_p0, %p76_p13 }
  0x21   :  { %84 = shalt.err (!%p81_p1)
}
  0x22   :  { %33 = dma.vmem_to_hbm [thread:$0]  %s31_s19, 128, %s126_s1, [#allocation4]  }
  0x23   :  { %87 = dma.done.wait [#allocation4], 128  }
  0x24   :  { %88 = vsyncadd [#allocation4], 4294967168 }
  0x25   :  { %37 = vsyncpa [#allocation3], 1 }
  0x26   :  { %38 = vsyncpa [#allocation4], 1 }

</bundles_post_ra>
